<compile_context>
chip_gen: v7x
topology: tpu7x:2x2x1
jax: 0.10.0
libtpu: 0.0.40
codegen_flags: <defaults>
</compile_context>

<pallas_src>
import functools

import jax
import jax.numpy as jnp
from jax import lax
from jax.experimental import pallas as pl
from jax.experimental.pallas import tpu as pltpu

_MAX_UNROLL_STEPS = 64  # fully unroll the recurrences up to this many steps


@functools.lru_cache(maxsize=None)
def _roll_is_numpy_convention() -> bool:
    """True iff pltpu.roll matches np.roll (element i -> i + shift).

    One-time tiny probe so the lane-rotated gate math is correct regardless of
    the rotate-direction convention of the installed jax/Mosaic version.
    """
    def probe(x_ref, o_ref):
        o_ref[...] = pltpu.roll(x_ref[...], shift=1, axis=1)

    x = jnp.broadcast_to(lax.iota(jnp.int32, 128)[None, :], (8, 128))
    y = pl.pallas_call(
        probe,
        out_shape=jax.ShapeDtypeStruct((8, 128), jnp.int32),
        in_specs=[pl.BlockSpec(memory_space=pltpu.MemorySpace.VMEM)],
        out_specs=pl.BlockSpec(memory_space=pltpu.MemorySpace.VMEM),
    )(x)
    return int(y[0, 1]) == 0


def _lstm_ae_kernel(x_ref,        # (S*B, D)   time-major encoder input (one batch tile)
                    wih_e_ref,    # (D, 4H)    encoder W_ih^T
                    whh_e_ref,    # (sdim, 4H) encoder W_hh^T (zero-row padded if packed)
                    b_e_ref,      # (1, 4H)    encoder b_ih + b_hh
                    whh_d_ref,    # (sdim, 4H) decoder W_hh^T (zero-row padded if packed)
                    b_d_ref,      # (1, 4H)    decoder b_ih + b_hh
                    wfused_ref,   # (sdim, 4H) wfc @ W_ih_d^T + W_hh_d^T (padded)
                    bfused_ref,   # (1, 4H)    bfc @ W_ih_d^T + b_d
                    wfc_ref,      # (sdim, Dp) fc weight^T, zero-padded rows/cols (lane dense)
                    bfc_ref,      # (1, Dp)    fc bias, zero-padded cols
                    out_ref,      # (S*B, Dp)  predictions, forward time order
                    xp_ref,       # VMEM scratch (S*B, 4H): hoisted input projection
                    hall_ref,     # VMEM scratch (S*B, sdim): decoder hidden states
                    *, seq_len, batch, hidden, lane_pack, f_shift, o_shift,
                    mm_dtype, max_unroll):
    S, B, H = seq_len, batch, hidden
    G = 4 * H

    # Hoisted weight loads / casts (MXU operands in mm_dtype, f32 accumulation).
    whh_e = whh_e_ref[...].astype(mm_dtype)
    whh_d = whh_d_ref[...].astype(mm_dtype)
    w_fused = wfused_ref[...].astype(mm_dtype)
    wfc = wfc_ref[...].astype(mm_dtype)
    # Bias broadcasts hoisted out of the loops.
    b_d_b = jnp.broadcast_to(b_d_ref[...], (B, G))
    b_fused_b = jnp.broadcast_to(bfused_ref[...], (B, G))

    def gate_math(gates, c):
        # PyTorch gate order along lanes: [i | f | g | o].
        if lane_pack:
            # Full-vreg EUP nonlinearities + XLU lane rotations; no 32-lane
            # slices on the serial chain.  Only lanes [0, H) of the returned
            # state are meaningful; the other lanes stay bounded garbage that
            # is cancelled by the zero-padded weight rows.
            sg = jax.nn.sigmoid(gates)
            tg = jnp.tanh(gates)
            f_g = pltpu.roll(sg, shift=f_shift, axis=1)      # f -> lanes [0, H)
            g_g = pltpu.roll(tg, shift=2 * H, axis=1)        # g -> lanes [0, H)
            o_g = pltpu.roll(sg, shift=o_shift, axis=1)      # o -> lanes [0, H)
            c_new = f_g * c + sg * g_g                       # i is sg at [0, H)
            h_new = o_g * jnp.tanh(c_new)
            return h_new, c_new
        # Fallback (H a multiple of 128, or odd H): lane-aligned / plain slices.
        i = jax.nn.sigmoid(gates[:, 0 * H:1 * H])
        f = jax.nn.sigmoid(gates[:, 1 * H:2 * H])
        g = jnp.tanh(gates[:, 2 * H:3 * H])
        o = jax.nn.sigmoid(gates[:, 3 * H:4 * H])
        c_new = f * c + i * g
        return o * jnp.tanh(c_new), c_new

    def row_slice(t):
        off = t * B
        if not isinstance(off, int):
            off = pl.multiple_of(off, 8)     # B is padded to a multiple of 8
        return pl.ds(off, B)

    def run_steps(step_fn, carry, start, stop):
        if stop - start <= 0:
            return carry
        if S <= max_unroll:                  # full static unroll (LLO scheduling)
            for t in range(start, stop):
                carry = step_fn(t, carry)
            return carry
        return lax.fori_loop(start, stop, step_fn, carry, unroll=8)

    # ---------------- Encoder -----------------
    # Input projection hoisted out of the recurrence: one (S*B, D) x (D, 4H)
    # matmul with the bias folded in, written once to a VMEM scratch so every
    # per-step read is a sublane-aligned slice off the critical path.
    xp_ref[...] = (jnp.dot(x_ref[...].astype(mm_dtype),
                           wih_e_ref[...].astype(mm_dtype),
                           preferred_element_type=jnp.float32)
                   + jnp.broadcast_to(b_e_ref[...], (S * B, G)))

    sdim = G if lane_pack else H
    h = jnp.zeros((B, sdim), jnp.float32)
    c = jnp.zeros((B, sdim), jnp.float32)

    def enc_step(t, carry):
        h, c = carry
        gates = (xp_ref[row_slice(t), :]
                 + jnp.dot(h.astype(mm_dtype), whh_e,
                           preferred_element_type=jnp.float32))
        return gate_math(gates, c)

    h, c = run_steps(enc_step, (h, c), 0, S)

    # ---------------- Decoder -----------------
    # t = 0 peeled: decoder input is all-zeros -> only the recurrent term.
    gates = jnp.dot(h.astype(mm_dtype), whh_d,
                    preferred_element_type=jnp.float32) + b_d_b
    h, c = gate_math(gates, c)
    hall_ref[row_slice(0), :] = h

    # t >= 1: fc folded into the recurrence -> one dependent matmul per step;
    # h stored per step into the VMEM slab (spare vst slot, no concat barrier).
    def dec_step(t, carry):
        h, c = carry
        g = jnp.dot(h.astype(mm_dtype), w_fused,
                    preferred_element_type=jnp.float32) + b_fused_b
        h, c = gate_math(g, c)
        hall_ref[row_slice(t), :] = h
        return (h, c)

    run_steps(dec_step, (h, c), 1, S)

    # fc output projection off the critical path: one batched matmul and a
    # single lane-dense store (Dp is a multiple of 128).
    preds = (jnp.dot(hall_ref[...].astype(mm_dtype), wfc,
                     preferred_element_type=jnp.float32)
             + jnp.broadcast_to(bfc_ref[...], (S * B, bfc_ref.shape[1])))
    out_ref[...] = preds


def lstm_autoencoder_forward(src, params, *, use_bf16_matmul=None):
    """src: (batch, seq, feat) float32. Returns [reconstruct_output, src]."""
    B, S, D = src.shape
    H = params["whh_e"].shape[0]
    G = 4 * H
    f32 = jnp.float32

    # Layout decisions (all pure wrapper-side plumbing).
    lane_pack = (H % 128 != 0) and (G % 128 == 0)   # full-lane packed state + rolls
    sdim = G if lane_pack else H                    # state width seen by the kernel
    Dp = ((D + 127) // 128) * 128                   # lane-dense output width
    Bp = ((B + 7) // 8) * 8                         # sublane-aligned batch
    if use_bf16_matmul is None:
        use_bf16_matmul = H >= 128                  # negligible / numerics risk at small H
    mm_dtype = jnp.bfloat16 if use_bf16_matmul else jnp.float32

    if lane_pack:
        f_shift, o_shift = (3 * H, H) if _roll_is_numpy_convention() else (H, 3 * H)
    else:
        f_shift, o_shift = 0, 0

    # Megacore: the batch is embarrassingly parallel across both LSTMs, so split
    # it over a parallel grid when it is big enough (2 TCs on v7x).
    num_tiles = 2 if (Bp >= 16 and Bp % 16 == 0) else 1
    Bt = Bp // num_tiles

    # ---- parameter prep (constant-foldable across calls) ----
    wih_e = params["wih_e"].astype(f32)     # (D, 4H)
    whh_e = params["whh_e"].astype(f32)     # (H, 4H)
    b_e = params["b_e"].astype(f32)         # (1, 4H)
    wih_d = params["wih_d"].astype(f32)
    whh_d = params["whh_d"].astype(f32)
    b_d = params["b_d"].astype(f32)
    wfc = params["wfc"].astype(f32)         # (H, D)
    bfc = params["bfc"].astype(f32)         # (1, D)

    # fc folded into the decoder recurrence, precomputed here (off the kernel's
    # serial path):  gates(t) = h(t-1) @ (wfc@wih_d + whh_d) + (bfc@wih_d + b_d)
    w_fused = wfc @ wih_d + whh_d           # (H, 4H)
    b_fused = bfc @ wih_d + b_d             # (1, 4H)

    def pad_state_rows(w):
        # zero rows [H, sdim) so the packed state's garbage lanes contribute 0
        if sdim == H:
            return w
        return jnp.concatenate([w, jnp.zeros((sdim - H, w.shape[1]), f32)], axis=0)

    whh_e_k = pad_state_rows(whh_e)                             # (sdim, 4H)
    whh_d_k = pad_state_rows(whh_d)                             # (sdim, 4H)
    wfused_k = pad_state_rows(w_fused)                          # (sdim, 4H)
    wfc_k = jnp.zeros((sdim, Dp), f32).at[:H, :D].set(wfc)      # lane-dense fc
    bfc_k = jnp.zeros((1, Dp), f32).at[:, :D].set(bfc)

    # ---- input prep: time-major, batch padded to sublane multiple, pre-tiled ----
    x = jnp.transpose(src.astype(f32), (1, 0, 2))               # (S, B, D)
    if Bp > B:
        x = jnp.concatenate([x, jnp.zeros((S, Bp - B, D), f32)], axis=1)
    x_tiles = (x.reshape(S, num_tiles, Bt, D)
               .transpose(1, 0, 2, 3)
               .reshape(num_tiles, S * Bt, D))                  # (T, S*Bt, D)

    # ---- cost estimate & VMEM budget ----
    flops = (2 * S * Bp * D * G            # hoisted encoder input projection
             + 2 * S * Bp * sdim * G       # encoder recurrence
             + 2 * S * Bp * sdim * G       # decoder recurrence
             + 2 * S * Bp * sdim * Dp)     # batched fc
    transcendentals = 2 * S * Bp * (3 * G if lane_pack else 6 * H)
    bytes_accessed = 4 * (S * Bp * D + S * Bp * Dp
                          + D * G + 3 * sdim * G + 3 * G + sdim * Dp + Dp)
    cost = pl.CostEstimate(flops=flops, transcendentals=transcendentals,
                           bytes_accessed=bytes_accessed)

    vmem_need = 4 * (2 * S * Bt * (D + Dp)                       # in/out blocks (2x buf)
                     + S * Bt * (G + sdim)                       # scratch slabs
                     + 2 * (D * G + 3 * sdim * G + 3 * G + sdim * Dp + Dp))
    vmem_limit = None
    if vmem_need > 30 * (1 << 20):
        # TODO(synk): for very large S*B (v7x has only 64 MiB VMEM) additionally
        # tile the hoisted x_proj / h_all slabs over an extra grid axis on S.
        vmem_limit = min(int(vmem_need * 1.25), 112 * (1 << 20))

    kernel = functools.partial(
        _lstm_ae_kernel, seq_len=S, batch=Bt, hidden=H, lane_pack=lane_pack,
        f_shift=f_shift, o_shift=o_shift, mm_dtype=mm_dtype,
        max_unroll=_MAX_UNROLL_STEPS)

    def full(shape):
        return pl.BlockSpec(shape, lambda g: (0, 0))

    out_tiles = pl.pallas_call(
        kernel,
        out_shape=jax.ShapeDtypeStruct((num_tiles, S * Bt, Dp), f32),
        grid=(num_tiles,),
        in_specs=[pl.BlockSpec((None, S * Bt, D), lambda g: (g, 0, 0)),
                  full(wih_e.shape), full(whh_e_k.shape), full(b_e.shape),
                  full(whh_d_k.shape), full(b_d.shape),
                  full(wfused_k.shape), full(b_fused.shape),
                  full(wfc_k.shape), full(bfc_k.shape)],
        out_specs=pl.BlockSpec((None, S * Bt, Dp), lambda g: (g, 0, 0)),
        scratch_shapes=[pltpu.VMEM((S * Bt, G), f32),       # hoisted x projection
                        pltpu.VMEM((S * Bt, sdim), f32)],   # decoder hidden slab
        compiler_params=pltpu.CompilerParams(
            dimension_semantics=("parallel",),
            vmem_limit_bytes=vmem_limit),
        cost_estimate=cost,
    )(x_tiles, wih_e, whh_e_k, b_e, whh_d_k, b_d, wfused_k, b_fused, wfc_k, bfc_k)

    # un-tile, drop batch/lane padding, back to batch_first, reverse time
    out = (out_tiles.reshape(num_tiles, S, Bt, Dp)
           .transpose(1, 0, 2, 3)
           .reshape(S, Bp, Dp))
    recon = jnp.transpose(out[:, :B, :D], (1, 0, 2))[:, ::-1, :]
    return [recon, src]


def init_params(key, input_dim, latent_dim):
    """Deterministic synthetic weights, PyTorch-style U(-1/sqrt(H), 1/sqrt(H))."""
    D, H = input_dim, latent_dim
    k = 1.0 / float(H) ** 0.5
    keys = jax.random.split(key, 10)
    u = lambda kk, shape: jax.random.uniform(kk, shape, jnp.float32, -k, k)
    return dict(
        wih_e=u(keys[0], (D, 4 * H)),
        whh_e=u(keys[1], (H, 4 * H)),
        b_e=u(keys[2], (1, 4 * H)) + u(keys[3], (1, 4 * H)),
        wih_d=u(keys[4], (D, 4 * H)),
        whh_d=u(keys[5], (H, 4 * H)),
        b_d=u(keys[6], (1, 4 * H)) + u(keys[7], (1, 4 * H)),
        wfc=u(keys[8], (H, D)),
        bfc=u(keys[9], (1, D)),
    )


def reference_forward(src, p):
    """Pure-JAX reference of the same forward (PyTorch-faithful op order)."""
    B, S, D = src.shape
    H = p["whh_e"].shape[0]

    def cell(x_t, h, c, wih, whh, b):
        g = x_t @ wih + h @ whh + b
        i, f, gg, o = (jax.nn.sigmoid(g[:, :H]), jax.nn.sigmoid(g[:, H:2 * H]),
                       jnp.tanh(g[:, 2 * H:3 * H]), jax.nn.sigmoid(g[:, 3 * H:]))
        c = f * c + i * gg
        return o * jnp.tanh(c), c

    h = jnp.zeros((B, H), jnp.float32)
    c = jnp.zeros((B, H), jnp.float32)
    for t in range(S):
        h, c = cell(src[:, t, :], h, c, p["wih_e"], p["whh_e"], p["b_e"])

    x_in = jnp.zeros((B, D), jnp.float32)
    outs = []
    for _ in range(S):
        h, c = cell(x_in, h, c, p["wih_d"], p["whh_d"], p["b_d"])
        x_in = h @ p["wfc"] + p["bfc"]
        outs.append(x_in)
    return jnp.stack(outs, axis=1)[:, ::-1, :]


if __name__ == "__main__":
    B, S, D, H = 2, 8, 16, 32   # batch, sequence_length, input_dim, latent_dim

    key = jax.random.PRNGKey(0)
    k_data, k_param = jax.random.split(key)
    src = jax.random.normal(k_data, (B, S, D), jnp.float32)
    params = init_params(k_param, input_dim=D, latent_dim=H)

    recon, src_out = lstm_autoencoder_forward(src, params)
    recon = jax.block_until_ready(recon)

    ref = jax.block_until_ready(reference_forward(src, params))
    assert recon.shape == (B, S, D)
    # The fc-into-recurrence fusion reassociates f32 sums slightly; compare at
    # 1e-4 (values are O(0.1-1)).
    assert jnp.allclose(recon, ref, atol=1e-4, rtol=1e-4), "mismatch vs reference"

    print("KERNEL_OK")
</pallas_src>

<mosaic_0001>
module attributes {stable_mosaic.version = 11 : i64} {
  func.func @probe(%arg0: memref<8x128xi32, #tpu.memory_space<vmem>>, %arg1: memref<8x128xi32, #tpu.memory_space<vmem>>) attributes {dimension_semantics = [], scalar_prefetch = 0 : i64, scratch_operands = 0 : i64, tpu.core_type = #tpu.core_type<tc>} {
    %c0 = arith.constant 0 : index
    %c0_0 = arith.constant 0 : index
    %0 = vector.load %arg0[%c0, %c0_0] : memref<8x128xi32, #tpu.memory_space<vmem>>, vector<8x128xi32>
    %c1_i32 = arith.constant 1 : i32
    %1 = tpu.dynamic_rotate %0 by %c1_i32 dim 1 : vector<8x128xi32>, i32 -> vector<8x128xi32>
    %c0_1 = arith.constant 0 : index
    %c0_2 = arith.constant 0 : index
    %2 = vector.load %arg1[%c0_1, %c0_2] : memref<8x128xi32, #tpu.memory_space<vmem>>, vector<8x128xi32>
    tpu.vector_store %arg1[%c0_1, %c0_2], %1 {strides = array<i32>} : memref<8x128xi32, #tpu.memory_space<vmem>>, vector<8x128xi32>,
    return
  }
}

</mosaic_0001>

<bundles_post_ra>
// kernel: tpu_custom_call.1
= control target key start
LH: loop header
LB: loop body
LE: loop exit
PB: predicated region body
PF: predicated region fallthrough
CT: control target
= control target key end

     0   :  { %6 = vsyncpa [#allocation3], 0  ;;  %s128_s0 = inlined_call_operand.hbm [shape: s32[8,128], index: 0, kind: input, shape index: {}]   ;;  %s129_s1 = inlined_call_operand.hbm [shape: s32[8,128], index: 1, kind: output, shape index: {}]  }
   0x1   :  { %7 = vsyncpa [#allocation4], 0  ;;  %s91_s6 = smov [#allocation2]   ;;  %s43_s10 = scalar_lea.hbm %s128_s0, 128 }
   0x2   :  { %s14_s7 = sshll.u32 %s91_s6, 4  ;;  %p44_p0 = scmp.ne.s32.totalorder %s128_s0, %s43_s10  ;;  %s15_s7 = int_to_ptr.vmem [resolvable:$true] %s14_s7 }
   0x3   :  { %p47_p1 = scmp.lt.u32.totalorder %s43_s10, %s128_s0 }
   0x5   :  { %p49_p2 = pnand %p47_p1, %p44_p0 }
   0x7   :  { %52 = shalt.err (!%p49_p2)
}
   0x8   :  { %s53_s15 = scalar_lea.vmem %s15_s7, 128  ;;  %p58_p4 = scmp.lt.s32.totalorder %s15_s7, %s15_s7 }
   0x9   :  { %p54_p3 = scmp.ne.s32.totalorder %s15_s7, %s53_s15  ;;  %p59_p5 = scmp.lt.s32.totalorder %s53_s15, %s53_s15 }
   0xb   :  { %p60_p6 = por %p59_p5, %p58_p4 }
   0xd   :  { %p61_p7 = pnand %p60_p6, %p54_p3 }
   0xf   :  { %64 = shalt.err (!%p61_p7)
}
  0x10   :  { %17 = dma.hbm_to_vmem [thread:$0]  %s128_s0, 128, %s15_s7, [#allocation3]  }
  0x11   :  { %87 = dma.done.wait [#allocation3], 128  }
  0x12   :  { %88 = vsyncadd [#allocation3], 4294967168  ;;  %v21_v0 = vld [vmem:[#allocation2] sm:$0xff]  ;;  %s92_s18 = smov 1   ;;  %s93_s19 = smov [#allocation5]  }
  0x13   :  { %22 = vrot.lane.b32.xlu0 %v21_v0, %s92_s18  ;;  %s31_s20 = sshll.u32 %s93_s19, 4  ;;  %s32_s20 = int_to_ptr.vmem [resolvable:$true] %s31_s20 }
  0x14   :  { %s65_s21 = scalar_lea.vmem %s32_s20, 128  ;;  %p70_p9 = scmp.lt.s32.totalorder %s32_s20, %s32_s20 }
  0x15   :  { %p66_p8 = scmp.ne.s32.totalorder %s32_s20, %s65_s21  ;;  %p71_p10 = scmp.lt.s32.totalorder %s65_s21, %s65_s21 }
  0x17   :  { %p72_p11 = por %p71_p10, %p70_p9 }
  0x19   :  { %p73_p12 = pnand %p72_p11, %p66_p8 }
  0x85   :  { %v23_v1 = vpop.permute.xlu0 %22 }
  0x86   :  { %24 = vst [vmem:[#allocation5] sm:$0xff] %v23_v1 }
  0x87   :  { %76 = shalt.err (!%p73_p12)
}
  0x88   :  { %s77_s0 = scalar_lea.hbm %s129_s1, 128 }
  0x89   :  { %p78_p13 = scmp.ne.s32.totalorder %s129_s1, %s77_s0  ;;  %p81_p0 = scmp.lt.u32.totalorder %s77_s0, %s129_s1 }
  0x8b   :  { %p83_p1 = pnand %p81_p0, %p78_p13 }
  0x8d   :  { %86 = shalt.err (!%p83_p1)
}
  0x8e   :  { %34 = dma.vmem_to_hbm [thread:$0]  %s32_s20, 128, %s129_s1, [#allocation4]  }
  0x8f   :  { %89 = dma.done.wait [#allocation4], 128  }
  0x90   :  { %90 = vsyncadd [#allocation4], 4294967168 }
  0x91   :  { %38 = vsyncpa [#allocation3], 1 }
  0x92   :  { %39 = vsyncpa [#allocation4], 1 }

</bundles_post_ra>
